<compile_context>
chip_gen: v5e
topology: v5e:2x2
jax: 0.10.0
libtpu: 0.0.40
codegen_flags: <defaults>
</compile_context>

<pallas_src>
import jax
import jax.numpy as jnp
from jax import lax
from jax.experimental import pallas as pl
from jax.experimental.pallas import tpu as pltpu


def _ceil_to(x, m):
    return -(-x // m) * m


# ---------------------------------------------------------------------------
# Device / VMEM detection (per-generation defaults)
# ---------------------------------------------------------------------------
def _device_kind():
    try:
        return jax.devices()[0].device_kind.lower()
    except Exception:
        return ""


def _vmem_capacity_bytes():
    try:
        cap = getattr(pltpu.get_tpu_info(), "vmem_capacity_bytes", None)
        if cap:
            return int(cap)
    except Exception:
        pass
    kind = _device_kind()
    if "v7" in kind:
        return 64 << 20
    if "v2" in kind or "v3" in kind:
        return 16 << 20
    return 128 << 20            # v4 / v5e / v6e


def _auto_dtypes(kind):
    """(param/stream dtype, activation dtype) per generation."""
    if "v6" in kind or "v7" in kind:
        return jnp.bfloat16, jnp.bfloat16     # bf16-native VPU: bf16 end-to-end
    return jnp.bfloat16, jnp.float32          # v5e & older: bf16 weights, f32 math


# ---------------------------------------------------------------------------
# In-kernel helpers
# ---------------------------------------------------------------------------
def _causal_conv(h, w_ref, b_ref, k, d, cin_p, masks_ref, shift_row, stacked):
    """Causal dilated conv1d (Conv1d + Chomp1d) on the MXU.

    h         : (Cin_p, NL) activation value, batch-major time on lanes.
    w_ref     : (Cout_p, k*Cin_p) Ref; column j*Cin_p + c holds w[o, c, j].
    b_ref     : (Cout_p, 1) f32 Ref.
    masks_ref : (rows, NL) Ref of {0,1} causal masks (activation dtype).
    stacked   : True  -> concat taps + one matmul (small contractions);
                False -> per-tap accumulating dots (v7x, Cin_p % 128 == 0).
    Returns (Cout_p, NL) f32.
    """
    def tap(j):
        s = (k - 1 - j) * d                    # causal right-shift for tap j
        if s == 0:
            return h
        r = shift_row[s]
        m = masks_ref[r:r + 1, :]              # (1, NL): zero where t < s
        return m * pltpu.roll(h, shift=s, axis=1)

    if stacked:
        taps = [tap(j) for j in range(k)]
        xs = taps[0] if k == 1 else jnp.concatenate(taps, axis=0)   # (k*Cin_p, NL)
        acc = jnp.dot(w_ref[...], xs, preferred_element_type=jnp.float32)
    else:
        acc = None
        for j in range(k):
            wj = w_ref[:, j * cin_p:(j + 1) * cin_p]
            pj = jnp.dot(wj, tap(j), preferred_element_type=jnp.float32)
            acc = pj if acc is None else acc + pj
    return acc + b_ref[...]


def _make_fused_kernel(layer_cfgs, k, shift_row, valid_row, *, act_dtype,
                       nb, L_pad, L_true):
    """layer_cfgs: tuple of (dilation, has_res, cin_p, cout_p, stacked1, stacked2)."""

    def kernel(*refs):
        x_ref, masks_ref, *w_refs, o_ref = refs
        h = x_ref[...].astype(act_dtype)                     # (C0_p, nb*L_pad)
        wi = 0
        for d, has_res, cin_p, cout_p, st1, st2 in layer_cfgs:
            w1, b1, w2, b2 = w_refs[wi:wi + 4]
            wi += 4
            if has_res:
                wr, br = w_refs[wi:wi + 2]
                wi += 2
            x_in = h
            # conv1 -> chomp -> relu   (dropout == identity at inference)
            h1 = jnp.maximum(
                _causal_conv(x_in, w1, b1, k, d, cin_p, masks_ref, shift_row, st1),
                0.0).astype(act_dtype)
            # conv2 -> chomp -> relu
            h2 = jnp.maximum(
                _causal_conv(h1, w2, b2, k, d, cout_p, masks_ref, shift_row, st2),
                0.0)
            if has_res:
                res = jnp.dot(wr[...], x_in,
                              preferred_element_type=jnp.float32) + br[...]
            else:
                res = x_in.astype(jnp.float32)
            h = jnp.maximum(h2 + res, 0.0).astype(act_dtype)

        # ---- head: per-batch-element mean over (real) time, then Linear ----
        wl_ref, bl_ref = w_refs[wi], w_refs[wi + 1]
        hv = h
        if L_pad != L_true:
            hv = hv * masks_ref[valid_row:valid_row + 1, :]   # zero padded cols
        cols = []
        for i in range(nb):                                   # lane-reduce per segment
            seg = hv[:, i * L_pad:(i + 1) * L_pad].astype(jnp.float32)
            cols.append(jnp.sum(seg, axis=-1, keepdims=True))
        m = (cols[0] if nb == 1 else jnp.concatenate(cols, axis=-1))
        m = m * (1.0 / L_true)                                # (C_p, nb) f32
        out = lax.dot_general(m, wl_ref[...].astype(jnp.float32),
                              (((0,), (0,)), ((), ())),
                              preferred_element_type=jnp.float32)  # (nb, OUT_P)
        o_ref[0] = out + bl_ref[...]                          # lane-dense store

    return kernel


# ---------------------------------------------------------------------------
# Wrapper-side weight layout plumbing (plain XLA, outside the kernel)
# ---------------------------------------------------------------------------
def _prep_conv_weight(w, cin_p, cout_p, dtype):
    """(Cout, Cin, K) -> (Cout_p, K*Cin_p) with w2d[o, j*Cin_p+c] = w[o, c, j]."""
    cout, cin, k = w.shape
    wt = jnp.transpose(w, (0, 2, 1))                          # (Cout, K, Cin)
    wt = jnp.pad(wt, ((0, cout_p - cout), (0, 0), (0, cin_p - cin)))
    return wt.reshape(cout_p, k * cin_p).astype(dtype)


def _prep_bias(b, cout_p):
    return jnp.pad(b, (0, cout_p - b.shape[0])).astype(jnp.float32).reshape(cout_p, 1)


def temporal_conv_net(x, block_params, wl, bl, kernel_size, *,
                      compute_dtype=None, batch_tile=None):
    """Full TCN forward pass:  x (N, C_in, L)  ->  (N, num_outputs)."""
    N, c0, L = x.shape
    num_outputs, c_last = wl.shape
    k = kernel_size

    kind = _device_kind()
    is_v7x = "v7" in kind
    if compute_dtype is None:
        param_dtype, act_dtype = _auto_dtypes(kind)
    else:
        param_dtype = act_dtype = jnp.dtype(compute_dtype)
    par_it = jnp.dtype(param_dtype).itemsize
    act_it = jnp.dtype(act_dtype).itemsize

    # Sub-32-bit dtypes pack 2 rows per sublane -> pad channels to 16, else 8.
    cpad = 16 if min(par_it, act_it) < 4 else 8
    out_pad = _ceil_to(num_outputs, 128)      # lane-dense head output width
    # Time padded to a lane multiple: full-width vregs everywhere; the mean
    # excludes padded columns (causality keeps them from polluting real ones).
    L_pad = _ceil_to(L, 128)

    # ---- layer / weight prep (independent of the batch tile) ----
    dilations = [2 ** i for i in range(len(block_params))]
    c0_p = _ceil_to(c0, cpad)
    w_args, layer_cfgs, couts_p = [], [], []
    cin_p = c0_p
    for p, d in zip(block_params, dilations):
        cout = p["w1"].shape[0]
        cout_p = _ceil_to(cout, cpad)
        has_res = "wr" in p
        # v7x: per-tap accumulating dots (MRB) beat the k-fold activation
        # concat once the contraction is already MXU-sized.
        st1 = not (is_v7x and cin_p >= 128 and cin_p % 128 == 0)
        st2 = not (is_v7x and cout_p >= 128 and cout_p % 128 == 0)
        w_args += [
            _prep_conv_weight(p["w1"], cin_p, cout_p, param_dtype),
            _prep_bias(p["b1"], cout_p),
            _prep_conv_weight(p["w2"], cout_p, cout_p, param_dtype),
            _prep_bias(p["b2"], cout_p),
        ]
        if has_res:
            w_args += [
                jnp.pad(p["wr"], ((0, cout_p - cout),
                                  (0, cin_p - p["wr"].shape[1]))).astype(param_dtype),
                _prep_bias(p["br"], cout_p),
            ]
        layer_cfgs.append((d, has_res, cin_p, cout_p, st1, st2))
        couts_p.append(cout_p)
        cin_p = cout_p

    # Head weight pre-transposed to (C_last_p, OUT_P) so the store is lane-dense.
    wl_t = jnp.pad(wl, ((0, out_pad - num_outputs), (0, cin_p - c_last))
                   ).astype(param_dtype).T
    bl_p = jnp.pad(bl, (0, out_pad - num_outputs)).astype(jnp.float32).reshape(1, out_pad)
    w_args += [wl_t, bl_p]
    weight_bytes = sum(int(a.size) * a.dtype.itemsize for a in w_args)

    # ---- causal-shift bookkeeping ----
    all_shifts = sorted({(k - 1 - j) * d for d in dilations for j in range(k)} - {0})
    shift_row = {s: r for r, s in enumerate(all_shifts)}
    valid_row = len(all_shifts)                    # last mask row: t < L (head mask)
    n_mask_rows = len(all_shifts) + 1

    # ---- VMEM budget -> batch tile (nb) ----
    vmem_cap = _vmem_capacity_bytes()
    vmem_limit = min(int(vmem_cap * 0.81), vmem_cap - (8 << 20))   # ~52M v7x, ~104M v6e
    c_max_p = max([c0_p] + couts_p)
    per_lane = ((k + 5) * c_max_p * act_it         # stacked taps + live activations
                + 3 * c_max_p * 4                  # f32 conv accumulator / residual
                + 2 * c0_p * par_it                # double-buffered input block
                + n_mask_rows * act_it)            # causal + valid masks
    budget = int(vmem_limit * 0.9) - weight_bytes - (1 << 20)

    if batch_tile is None:
        nb = 1
        cap_nb = max(1, N // 2)                    # >= 2 grid steps: megacore + pipeline
        cap_nb = min(cap_nb, max(1, 8192 // L_pad))  # diminishing returns past ~8k lanes
        for cand in range(1, cap_nb + 1):
            if N % cand == 0 and cand * L_pad * per_lane <= budget:
                nb = cand
        # TODO(synk): if even nb == 1 exceeds the VMEM budget (huge L*C, e.g. on
        # v7x's 64 MiB), a time-tiled grid axis with a (k-1)*d carry is needed.
    else:
        nb = batch_tile
        assert N % nb == 0, "batch_tile must divide N"
    nbt = N // nb
    nl = nb * L_pad

    # ---- activations: (N, C, L) -> (C0_p, N*L_pad), batch-major time on lanes ----
    x2 = jnp.pad(x, ((0, 0), (0, c0_p - c0), (0, L_pad - L)))
    x2 = jnp.transpose(x2, (1, 0, 2)).reshape(c0_p, N * L_pad).astype(param_dtype)

    # ---- per-tile causal masks + valid-time row (hoisted out of the kernel) ----
    t_in_seg = jnp.arange(nl) % L_pad
    rows = [(t_in_seg >= s) for s in all_shifts] + [t_in_seg < L]
    masks = jnp.stack(rows).astype(act_dtype)                    # (n_mask_rows, nl)

    kernel = _make_fused_kernel(tuple(layer_cfgs), k, shift_row, valid_row,
                                act_dtype=act_dtype, nb=nb, L_pad=L_pad, L_true=L)

    # Advisory cost estimate.
    flops = 0
    for _d, has_res, ci, co, _s1, _s2 in layer_cfgs:
        flops += 2 * N * L_pad * co * k * (ci + co)
        if has_res:
            flops += 2 * N * L_pad * co * ci
    flops += N * L_pad * cin_p + 2 * N * cin_p * out_pad
    bytes_accessed = (x2.size * x2.dtype.itemsize
                      + masks.size * masks.dtype.itemsize
                      + weight_bytes + N * out_pad * 4)

    def _build(single_buffer):
        def rep_spec(shape):
            nd = len(shape)
            idx = lambda b, _nd=nd: (0,) * _nd
            if single_buffer:
                # Block index never changes across the grid -> one buffer.
                return pl.BlockSpec(tuple(shape), idx,
                                    pipeline_mode=pl.Buffered(buffer_count=1))
            return pl.BlockSpec(tuple(shape), idx)

        in_specs = [pl.BlockSpec((c0_p, nl), lambda b: (0, b)),
                    rep_spec(masks.shape)]
        in_specs += [rep_spec(a.shape) for a in w_args]
        return pl.pallas_call(
            kernel,
            out_shape=jax.ShapeDtypeStruct((nbt, nb, out_pad), jnp.float32),
            grid=(nbt,),
            in_specs=in_specs,
            out_specs=pl.BlockSpec((1, nb, out_pad), lambda b: (b, 0, 0)),
            compiler_params=pltpu.CompilerParams(
                dimension_semantics=("parallel",),
                vmem_limit_bytes=int(vmem_limit)),
            cost_estimate=pl.CostEstimate(flops=int(flops), transcendentals=0,
                                          bytes_accessed=int(bytes_accessed)),
        )

    args = [x2, masks] + w_args
    try:
        out = _build(single_buffer=True)(*args)
    except Exception:
        # pl.Buffered(1) not supported on this jax version -> default buffering.
        out = _build(single_buffer=False)(*args)

    out = out.reshape(N, out_pad)          # lane-dense store, no transpose needed
    return out[:, :num_outputs]


# ---------------------------------------------------------------------------
# Deterministic parameter construction (mirrors the PyTorch module's shapes)
# ---------------------------------------------------------------------------
def _weight_norm(v, g):
    # torch weight_norm (dim=0): w = g * v / ||v||, norm over all dims but 0.
    norm = jnp.sqrt(jnp.sum(v * v, axis=(1, 2), keepdims=True))
    return g * v / norm


def init_params(key, num_inputs, num_channels, num_outputs, kernel_size):
    block_params = []
    in_c = num_inputs
    for out_c in num_channels:
        key, *ks = jax.random.split(key, 9)
        v1 = jax.random.normal(ks[0], (out_c, in_c, kernel_size), jnp.float32) * 0.3
        g1 = jnp.abs(jax.random.normal(ks[1], (out_c, 1, 1), jnp.float32)) + 0.5
        b1 = jax.random.normal(ks[2], (out_c,), jnp.float32) * 0.1
        v2 = jax.random.normal(ks[3], (out_c, out_c, kernel_size), jnp.float32) * 0.3
        g2 = jnp.abs(jax.random.normal(ks[4], (out_c, 1, 1), jnp.float32)) + 0.5
        b2 = jax.random.normal(ks[5], (out_c,), jnp.float32) * 0.1
        p = {"w1": _weight_norm(v1, g1), "b1": b1,
             "w2": _weight_norm(v2, g2), "b2": b2}
        if in_c != out_c:  # match_channels_length: Conv1d(kernel_size=1)
            p["wr"] = jax.random.normal(ks[6], (out_c, in_c), jnp.float32) * 0.3
            p["br"] = jax.random.normal(ks[7], (out_c,), jnp.float32) * 0.1
        block_params.append(p)
        in_c = out_c
    key, k1, k2 = jax.random.split(key, 3)
    wl = jax.random.normal(k1, (num_outputs, num_channels[-1]), jnp.float32) * 0.3
    bl = jax.random.normal(k2, (num_outputs,), jnp.float32) * 0.1
    return block_params, wl, bl


# ---------------------------------------------------------------------------
# Pure-JAX reference (for numerical verification of the Pallas kernel)
# ---------------------------------------------------------------------------
def ref_forward(x, block_params, wl, bl, kernel_size):
    y = x
    for i, p in enumerate(block_params):
        d = 2 ** i
        pd = (kernel_size - 1) * d

        def conv(z, w, b):
            o = lax.conv_general_dilated(
                z, w, (1,), [(pd, pd)], rhs_dilation=(d,),
                dimension_numbers=("NCH", "OIH", "NCH"),
            )
            return o[:, :, : z.shape[-1]] + b.reshape(1, -1, 1)  # Chomp1d + bias

        h = jax.nn.relu(conv(y, p["w1"], p["b1"]))
        h = jax.nn.relu(conv(h, p["w2"], p["b2"]))
        if "wr" in p:
            res = jnp.einsum("oc,ncl->nol", p["wr"], y) + p["br"].reshape(1, -1, 1)
        else:
            res = y
        y = jax.nn.relu(h + res)
    m = jnp.mean(y, axis=-1)          # == transpose(1,2) then mean over dim 1
    return m @ wl.T + bl


# ---------------------------------------------------------------------------
if __name__ == "__main__":
    # TemporalConvNet(num_inputs=4, num_channels=[8, 8], num_outputs=5, kernel_size=2)
    N, num_inputs, L = 2, 4, 16
    num_channels = (8, 8)
    num_outputs = 5
    kernel_size = 2

    key = jax.random.PRNGKey(0)
    key, kx = jax.random.split(key)
    x = jax.random.normal(kx, (N, num_inputs, L), jnp.float32)

    block_params, wl, bl = init_params(
        key, num_inputs, num_channels, num_outputs, kernel_size
    )

    ref = ref_forward(x, block_params, wl, bl, kernel_size)

    # Strict-precision path (f32 weights + activations): tight numerical check.
    out32 = temporal_conv_net(x, block_params, wl, bl, kernel_size,
                              compute_dtype=jnp.float32)
    out32 = jax.block_until_ready(out32)
    assert out32.shape == (N, num_outputs), out32.shape
    assert jnp.allclose(out32, ref, atol=1e-4, rtol=1e-4), (out32, ref)

    # Generation-tuned default (bf16 weights; bf16 acts on v6e/v7x): loose check.
    out_auto = temporal_conv_net(x, block_params, wl, bl, kernel_size)
    out_auto = jax.block_until_ready(out_auto)
    assert out_auto.shape == (N, num_outputs), out_auto.shape
    assert bool(jnp.all(jnp.isfinite(out_auto)))
    assert jnp.allclose(out_auto, ref, atol=1e-1, rtol=1e-1), (out_auto, ref)

    print("KERNEL_OK")
</pallas_src>

<mosaic_0001>
module attributes {stable_mosaic.version = 11 : i64} {
  func.func @kernel(%arg0: i32, %arg1: memref<8x128xf32, #tpu.memory_space<vmem>>, %arg2: memref<3x128xf32, #tpu.memory_space<vmem>>, %arg3: memref<8x16xf32, #tpu.memory_space<vmem>>, %arg4: memref<8x1xf32, #tpu.memory_space<vmem>>, %arg5: memref<8x16xf32, #tpu.memory_space<vmem>>, %arg6: memref<8x1xf32, #tpu.memory_space<vmem>>, %arg7: memref<8x8xf32, #tpu.memory_space<vmem>>, %arg8: memref<8x1xf32, #tpu.memory_space<vmem>>, %arg9: memref<8x16xf32, #tpu.memory_space<vmem>>, %arg10: memref<8x1xf32, #tpu.memory_space<vmem>>, %arg11: memref<8x16xf32, #tpu.memory_space<vmem>>, %arg12: memref<8x1xf32, #tpu.memory_space<vmem>>, %arg13: memref<8x128xf32, #tpu.memory_space<vmem>>, %arg14: memref<1x128xf32, #tpu.memory_space<vmem>>, %arg15: memref<1x1x128xf32, #tpu.memory_space<vmem>>) attributes {dimension_semantics = [#tpu.dimension_semantics<parallel>], iteration_bounds = array<i64: 2>, scalar_prefetch = 0 : i64, scratch_operands = 0 : i64, tpu.core_type = #tpu.core_type<tc>, window_params = [{transform_indices = @transform_0, window_bounds = array<i64: 8, 128>}, {pipeline_mode = #tpu.pipeline_mode<synchronous>, transform_indices = @transform_1, window_bounds = array<i64: 3, 128>}, {pipeline_mode = #tpu.pipeline_mode<synchronous>, transform_indices = @transform_2, window_bounds = array<i64: 8, 16>}, {pipeline_mode = #tpu.pipeline_mode<synchronous>, transform_indices = @transform_3, window_bounds = array<i64: 8, 1>}, {pipeline_mode = #tpu.pipeline_mode<synchronous>, transform_indices = @transform_4, window_bounds = array<i64: 8, 16>}, {pipeline_mode = #tpu.pipeline_mode<synchronous>, transform_indices = @transform_5, window_bounds = array<i64: 8, 1>}, {pipeline_mode = #tpu.pipeline_mode<synchronous>, transform_indices = @transform_6, window_bounds = array<i64: 8, 8>}, {pipeline_mode = #tpu.pipeline_mode<synchronous>, transform_indices = @transform_7, window_bounds = array<i64: 8, 1>}, {pipeline_mode = #tpu.pipeline_mode<synchronous>, transform_indices = @transform_8, window_bounds = array<i64: 8, 16>}, {pipeline_mode = #tpu.pipeline_mode<synchronous>, transform_indices = @transform_9, window_bounds = array<i64: 8, 1>}, {pipeline_mode = #tpu.pipeline_mode<synchronous>, transform_indices = @transform_10, window_bounds = array<i64: 8, 16>}, {pipeline_mode = #tpu.pipeline_mode<synchronous>, transform_indices = @transform_11, window_bounds = array<i64: 8, 1>}, {pipeline_mode = #tpu.pipeline_mode<synchronous>, transform_indices = @transform_12, window_bounds = array<i64: 8, 128>}, {pipeline_mode = #tpu.pipeline_mode<synchronous>, transform_indices = @transform_13, window_bounds = array<i64: 1, 128>}, {transform_indices = @transform_14, window_bounds = array<i64: 1, 1, 128>}]} {
    %c0 = arith.constant 0 : index
    %c0_0 = arith.constant 0 : index
    %0 = vector.load %arg1[%c0, %c0_0] : memref<8x128xf32, #tpu.memory_space<vmem>>, vector<8x128xf32>
    %c0_1 = arith.constant 0 : index
    %c0_2 = arith.constant 0 : index
    %1 = vector.load %arg2[%c0_1, %c0_2] : memref<3x128xf32, #tpu.memory_space<vmem>>, vector<1x128xf32>
    %c1_i32 = arith.constant 1 : i32
    %2 = tpu.dynamic_rotate %0 by %c1_i32 dim 1 : vector<8x128xf32>, i32 -> vector<8x128xf32>
    %3 = vector.broadcast %1 : vector<1x128xf32> to vector<8x128xf32>
    %4 = arith.mulf %3, %2 : vector<8x128xf32>
    %5 = tpu.concatenate %4, %0 in 0 : vector<8x128xf32>, vector<8x128xf32> -> vector<16x128xf32>
    %c0_3 = arith.constant 0 : index
    %c0_4 = arith.constant 0 : index
    %6 = vector.load %arg3[%c0_3, %c0_4] : memref<8x16xf32, #tpu.memory_space<vmem>>, vector<8x16xf32>
    %cst = arith.constant dense<0.000000e+00> : vector<8x128xf32>
    %7 = tpu.matmul %6, %5, %cst {dimension_numbers = #tpu.dot_dimension_numbers<[1], [0], [0], [1], [0, 0, 1, 1], [], []>} : vector<8x16xf32>, vector<16x128xf32>, vector<8x128xf32> -> vector<8x128xf32>
    %c0_5 = arith.constant 0 : index
    %c0_6 = arith.constant 0 : index
    %8 = vector.load %arg4[%c0_5, %c0_6] : memref<8x1xf32, #tpu.memory_space<vmem>>, vector<8x1xf32>
    %9 = vector.broadcast %8 : vector<8x1xf32> to vector<8x128xf32>
    %10 = arith.addf %7, %9 : vector<8x128xf32>
    %cst_7 = arith.constant 0.000000e+00 : f32
    %11 = vector.broadcast %cst_7 : f32 to vector<8x128xf32>
    %12 = arith.maximumf %10, %11 : vector<8x128xf32>
    %c0_8 = arith.constant 0 : index
    %c0_9 = arith.constant 0 : index
    %13 = vector.load %arg2[%c0_8, %c0_9] : memref<3x128xf32, #tpu.memory_space<vmem>>, vector<1x128xf32>
    %c1_i32_10 = arith.constant 1 : i32
    %14 = tpu.dynamic_rotate %12 by %c1_i32_10 dim 1 : vector<8x128xf32>, i32 -> vector<8x128xf32>
    %15 = vector.broadcast %13 : vector<1x128xf32> to vector<8x128xf32>
    %16 = arith.mulf %15, %14 : vector<8x128xf32>
    %17 = tpu.concatenate %16, %12 in 0 : vector<8x128xf32>, vector<8x128xf32> -> vector<16x128xf32>
    %c0_11 = arith.constant 0 : index
    %c0_12 = arith.constant 0 : index
    %18 = vector.load %arg5[%c0_11, %c0_12] : memref<8x16xf32, #tpu.memory_space<vmem>>, vector<8x16xf32>
    %cst_13 = arith.constant dense<0.000000e+00> : vector<8x128xf32>
    %19 = tpu.matmul %18, %17, %cst_13 {dimension_numbers = #tpu.dot_dimension_numbers<[1], [0], [0], [1], [0, 0, 1, 1], [], []>} : vector<8x16xf32>, vector<16x128xf32>, vector<8x128xf32> -> vector<8x128xf32>
    %c0_14 = arith.constant 0 : index
    %c0_15 = arith.constant 0 : index
    %20 = vector.load %arg6[%c0_14, %c0_15] : memref<8x1xf32, #tpu.memory_space<vmem>>, vector<8x1xf32>
    %21 = vector.broadcast %20 : vector<8x1xf32> to vector<8x128xf32>
    %22 = arith.addf %19, %21 : vector<8x128xf32>
    %cst_16 = arith.constant 0.000000e+00 : f32
    %23 = vector.broadcast %cst_16 : f32 to vector<8x128xf32>
    %24 = arith.maximumf %22, %23 : vector<8x128xf32>
    %c0_17 = arith.constant 0 : index
    %c0_18 = arith.constant 0 : index
    %25 = vector.load %arg7[%c0_17, %c0_18] : memref<8x8xf32, #tpu.memory_space<vmem>>, vector<8x8xf32>
    %cst_19 = arith.constant dense<0.000000e+00> : vector<8x128xf32>
    %26 = tpu.matmul %25, %0, %cst_19 {dimension_numbers = #tpu.dot_dimension_numbers<[1], [0], [0], [1], [0, 0, 1, 1], [], []>} : vector<8x8xf32>, vector<8x128xf32>, vector<8x128xf32> -> vector<8x128xf32>
    %c0_20 = arith.constant 0 : index
    %c0_21 = arith.constant 0 : index
    %27 = vector.load %arg8[%c0_20, %c0_21] : memref<8x1xf32, #tpu.memory_space<vmem>>, vector<8x1xf32>
    %28 = vector.broadcast %27 : vector<8x1xf32> to vector<8x128xf32>
    %29 = arith.addf %26, %28 : vector<8x128xf32>
    %30 = arith.addf %24, %29 : vector<8x128xf32>
    %cst_22 = arith.constant 0.000000e+00 : f32
    %31 = vector.broadcast %cst_22 : f32 to vector<8x128xf32>
    %32 = arith.maximumf %30, %31 : vector<8x128xf32>
    %c1 = arith.constant 1 : index
    %c0_23 = arith.constant 0 : index
    %33 = vector.load %arg2[%c1, %c0_23] : memref<3x128xf32, #tpu.memory_space<vmem>>, vector<1x128xf32>
    %c2_i32 = arith.constant 2 : i32
    %34 = tpu.dynamic_rotate %32 by %c2_i32 dim 1 : vector<8x128xf32>, i32 -> vector<8x128xf32>
    %35 = vector.broadcast %33 : vector<1x128xf32> to vector<8x128xf32>
    %36 = arith.mulf %35, %34 : vector<8x128xf32>
    %37 = tpu.concatenate %36, %32 in 0 : vector<8x128xf32>, vector<8x128xf32> -> vector<16x128xf32>
    %c0_24 = arith.constant 0 : index
    %c0_25 = arith.constant 0 : index
    %38 = vector.load %arg9[%c0_24, %c0_25] : memref<8x16xf32, #tpu.memory_space<vmem>>, vector<8x16xf32>
    %cst_26 = arith.constant dense<0.000000e+00> : vector<8x128xf32>
    %39 = tpu.matmul %38, %37, %cst_26 {dimension_numbers = #tpu.dot_dimension_numbers<[1], [0], [0], [1], [0, 0, 1, 1], [], []>} : vector<8x16xf32>, vector<16x128xf32>, vector<8x128xf32> -> vector<8x128xf32>
    %c0_27 = arith.constant 0 : index
    %c0_28 = arith.constant 0 : index
    %40 = vector.load %arg10[%c0_27, %c0_28] : memref<8x1xf32, #tpu.memory_space<vmem>>, vector<8x1xf32>
    %41 = vector.broadcast %40 : vector<8x1xf32> to vector<8x128xf32>
    %42 = arith.addf %39, %41 : vector<8x128xf32>
    %cst_29 = arith.constant 0.000000e+00 : f32
    %43 = vector.broadcast %cst_29 : f32 to vector<8x128xf32>
    %44 = arith.maximumf %42, %43 : vector<8x128xf32>
    %c1_30 = arith.constant 1 : index
    %c0_31 = arith.constant 0 : index
    %45 = vector.load %arg2[%c1_30, %c0_31] : memref<3x128xf32, #tpu.memory_space<vmem>>, vector<1x128xf32>
    %c2_i32_32 = arith.constant 2 : i32
    %46 = tpu.dynamic_rotate %44 by %c2_i32_32 dim 1 : vector<8x128xf32>, i32 -> vector<8x128xf32>
    %47 = vector.broadcast %45 : vector<1x128xf32> to vector<8x128xf32>
    %48 = arith.mulf %47, %46 : vector<8x128xf32>
    %49 = tpu.concatenate %48, %44 in 0 : vector<8x128xf32>, vector<8x128xf32> -> vector<16x128xf32>
    %c0_33 = arith.constant 0 : index
    %c0_34 = arith.constant 0 : index
    %50 = vector.load %arg11[%c0_33, %c0_34] : memref<8x16xf32, #tpu.memory_space<vmem>>, vector<8x16xf32>
    %cst_35 = arith.constant dense<0.000000e+00> : vector<8x128xf32>
    %51 = tpu.matmul %50, %49, %cst_35 {dimension_numbers = #tpu.dot_dimension_numbers<[1], [0], [0], [1], [0, 0, 1, 1], [], []>} : vector<8x16xf32>, vector<16x128xf32>, vector<8x128xf32> -> vector<8x128xf32>
    %c0_36 = arith.constant 0 : index
    %c0_37 = arith.constant 0 : index
    %52 = vector.load %arg12[%c0_36, %c0_37] : memref<8x1xf32, #tpu.memory_space<vmem>>, vector<8x1xf32>
    %53 = vector.broadcast %52 : vector<8x1xf32> to vector<8x128xf32>
    %54 = arith.addf %51, %53 : vector<8x128xf32>
    %cst_38 = arith.constant 0.000000e+00 : f32
    %55 = vector.broadcast %cst_38 : f32 to vector<8x128xf32>
    %56 = arith.maximumf %54, %55 : vector<8x128xf32>
    %57 = arith.addf %56, %32 : vector<8x128xf32>
    %cst_39 = arith.constant 0.000000e+00 : f32
    %58 = vector.broadcast %cst_39 : f32 to vector<8x128xf32>
    %59 = arith.maximumf %57, %58 : vector<8x128xf32>
    %c2 = arith.constant 2 : index
    %c0_40 = arith.constant 0 : index
    %60 = vector.load %arg2[%c2, %c0_40] : memref<3x128xf32, #tpu.memory_space<vmem>>, vector<1x128xf32>
    %61 = vector.broadcast %60 : vector<1x128xf32> to vector<8x128xf32>
    %62 = arith.mulf %59, %61 : vector<8x128xf32>
    %cst_41 = arith.constant dense<0.000000e+00> : vector<8xf32>
    %63 = vector.multi_reduction <add>, %62, %cst_41 [1] : vector<8x128xf32> to vector<8xf32>
    %64 = vector.shape_cast %63 : vector<8xf32> to vector<8x1xf32>
    %cst_42 = arith.constant 6.250000e-02 : f32
    %65 = vector.broadcast %cst_42 : f32 to vector<8x1xf32>
    %66 = arith.mulf %64, %65 : vector<8x1xf32>
    %c0_43 = arith.constant 0 : index
    %c0_44 = arith.constant 0 : index
    %67 = vector.load %arg13[%c0_43, %c0_44] : memref<8x128xf32, #tpu.memory_space<vmem>>, vector<8x128xf32>
    %cst_45 = arith.constant dense<0.000000e+00> : vector<1x128xf32>
    %68 = tpu.matmul %66, %67, %cst_45 {dimension_numbers = #tpu.dot_dimension_numbers<[0], [0], [1], [1], [0, 1, 1, 1], [], []>} : vector<8x1xf32>, vector<8x128xf32>, vector<1x128xf32> -> vector<1x128xf32>
    %c0_46 = arith.constant 0 : index
    %c0_47 = arith.constant 0 : index
    %69 = vector.load %arg14[%c0_46, %c0_47] : memref<1x128xf32, #tpu.memory_space<vmem>>, vector<1x128xf32>
    %70 = arith.addf %68, %69 : vector<1x128xf32>
    %c0_48 = arith.constant 0 : index
    %c0_49 = arith.constant 0 : index
    %c0_50 = arith.constant 0 : index
    %71 = vector.load %arg15[%c0_48, %c0_49, %c0_50] : memref<1x1x128xf32, #tpu.memory_space<vmem>>, vector<1x1x128xf32>
    %72 = vector.shape_cast %71 : vector<1x1x128xf32> to vector<1x128xf32>
    %73 = vector.shape_cast %70 : vector<1x128xf32> to vector<1x1x128xf32>
    tpu.vector_store %arg15[%c0_48, %c0_49, %c0_50], %73 {strides = array<i32>} : memref<1x1x128xf32, #tpu.memory_space<vmem>>, vector<1x1x128xf32>,
    return
  }
  func.func @transform_0(%arg0: i32) -> (i32, i32) {
    %c0_i32 = arith.constant 0 : i32
    %c0_i32_0 = arith.constant 0 : i32
    return %c0_i32, %arg0 : i32, i32
  }
  func.func @transform_1(%arg0: i32) -> (i32, i32) {
    %c0_i32 = arith.constant 0 : i32
    %c0_i32_0 = arith.constant 0 : i32
    %c0_i32_1 = arith.constant 0 : i32
    return %c0_i32, %c0_i32_0 : i32, i32
  }
  func.func @transform_2(%arg0: i32) -> (i32, i32) {
    %c0_i32 = arith.constant 0 : i32
    %c0_i32_0 = arith.constant 0 : i32
    %c0_i32_1 = arith.constant 0 : i32
    return %c0_i32, %c0_i32_0 : i32, i32
  }
  func.func @transform_3(%arg0: i32) -> (i32, i32) {
    %c0_i32 = arith.constant 0 : i32
    %c0_i32_0 = arith.constant 0 : i32
    %c0_i32_1 = arith.constant 0 : i32
    return %c0_i32, %c0_i32_0 : i32, i32
  }
  func.func @transform_4(%arg0: i32) -> (i32, i32) {
    %c0_i32 = arith.constant 0 : i32
    %c0_i32_0 = arith.constant 0 : i32
    %c0_i32_1 = arith.constant 0 : i32
    return %c0_i32, %c0_i32_0 : i32, i32
  }
  func.func @transform_5(%arg0: i32) -> (i32, i32) {
    %c0_i32 = arith.constant 0 : i32
    %c0_i32_0 = arith.constant 0 : i32
    %c0_i32_1 = arith.constant 0 : i32
    return %c0_i32, %c0_i32_0 : i32, i32
  }
  func.func @transform_6(%arg0: i32) -> (i32, i32) {
    %c0_i32 = arith.constant 0 : i32
    %c0_i32_0 = arith.constant 0 : i32
    %c0_i32_1 = arith.constant 0 : i32
    return %c0_i32, %c0_i32_0 : i32, i32
  }
  func.func @transform_7(%arg0: i32) -> (i32, i32) {
    %c0_i32 = arith.constant 0 : i32
    %c0_i32_0 = arith.constant 0 : i32
    %c0_i32_1 = arith.constant 0 : i32
    return %c0_i32, %c0_i32_0 : i32, i32
  }
  func.func @transform_8(%arg0: i32) -> (i32, i32) {
    %c0_i32 = arith.constant 0 : i32
    %c0_i32_0 = arith.constant 0 : i32
    %c0_i32_1 = arith.constant 0 : i32
    return %c0_i32, %c0_i32_0 : i32, i32
  }
  func.func @transform_9(%arg0: i32) -> (i32, i32) {
    %c0_i32 = arith.constant 0 : i32
    %c0_i32_0 = arith.constant 0 : i32
    %c0_i32_1 = arith.constant 0 : i32
    return %c0_i32, %c0_i32_0 : i32, i32
  }
  func.func @transform_10(%arg0: i32) -> (i32, i32) {
    %c0_i32 = arith.constant 0 : i32
    %c0_i32_0 = arith.constant 0 : i32
    %c0_i32_1 = arith.constant 0 : i32
    return %c0_i32, %c0_i32_0 : i32, i32
  }
  func.func @transform_11(%arg0: i32) -> (i32, i32) {
    %c0_i32 = arith.constant 0 : i32
    %c0_i32_0 = arith.constant 0 : i32
    %c0_i32_1 = arith.constant 0 : i32
    return %c0_i32, %c0_i32_0 : i32, i32
  }
  func.func @transform_12(%arg0: i32) -> (i32, i32) {
    %c0_i32 = arith.constant 0 : i32
    %c0_i32_0 = arith.constant 0 : i32
    %c0_i32_1 = arith.constant 0 : i32
    return %c0_i32, %c0_i32_0 : i32, i32
  }
  func.func @transform_13(%arg0: i32) -> (i32, i32) {
    %c0_i32 = arith.constant 0 : i32
    %c0_i32_0 = arith.constant 0 : i32
    %c0_i32_1 = arith.constant 0 : i32
    return %c0_i32, %c0_i32_0 : i32, i32
  }
  func.func @transform_14(%arg0: i32) -> (i32, i32, i32) {
    %c0_i32 = arith.constant 0 : i32
    %c0_i32_0 = arith.constant 0 : i32
    %c0_i32_1 = arith.constant 0 : i32
    return %arg0, %c0_i32, %c0_i32_0 : i32, i32, i32
  }
}

module attributes {stable_mosaic.version = 11 : i64} {
  func.func @kernel(%arg0: i32, %arg1: memref<8x128xf32, #tpu.memory_space<vmem>>, %arg2: memref<3x128xf32, #tpu.memory_space<vmem>>, %arg3: memref<8x16xf32, #tpu.memory_space<vmem>>, %arg4: memref<8x1xf32, #tpu.memory_space<vmem>>, %arg5: memref<8x16xf32, #tpu.memory_space<vmem>>, %arg6: memref<8x1xf32, #tpu.memory_space<vmem>>, %arg7: memref<8x8xf32, #tpu.memory_space<vmem>>, %arg8: memref<8x1xf32, #tpu.memory_space<vmem>>, %arg9: memref<8x16xf32, #tpu.memory_space<vmem>>, %arg10: memref<8x1xf32, #tpu.memory_space<vmem>>, %arg11: memref<8x16xf32, #tpu.memory_space<vmem>>, %arg12: memref<8x1xf32, #tpu.memory_space<vmem>>, %arg13: memref<8x128xf32, #tpu.memory_space<vmem>>, %arg14: memref<1x128xf32, #tpu.memory_space<vmem>>, %arg15: memref<1x1x128xf32, #tpu.memory_space<vmem>>) attributes {dimension_semantics = [#tpu.dimension_semantics<parallel>], iteration_bounds = array<i64: 2>, scalar_prefetch = 0 : i64, scratch_operands = 0 : i64, tpu.core_type = #tpu.core_type<tc>, window_params = [{transform_indices = @transform_0, window_bounds = array<i64: 8, 128>}, {pipeline_mode = #tpu.pipeline_mode<synchronous>, transform_indices = @transform_1, window_bounds = array<i64: 3, 128>}, {pipeline_mode = #tpu.pipeline_mode<synchronous>, transform_indices = @transform_2, window_bounds = array<i64: 8, 16>}, {pipeline_mode = #tpu.pipeline_mode<synchronous>, transform_indices = @transform_3, window_bounds = array<i64: 8, 1>}, {pipeline_mode = #tpu.pipeline_mode<synchronous>, transform_indices = @transform_4, window_bounds = array<i64: 8, 16>}, {pipeline_mode = #tpu.pipeline_mode<synchronous>, transform_indices = @transform_5, window_bounds = array<i64: 8, 1>}, {pipeline_mode = #tpu.pipeline_mode<synchronous>, transform_indices = @transform_6, window_bounds = array<i64: 8, 8>}, {pipeline_mode = #tpu.pipeline_mode<synchronous>, transform_indices = @transform_7, window_bounds = array<i64: 8, 1>}, {pipeline_mode = #tpu.pipeline_mode<synchronous>, transform_indices = @transform_8, window_bounds = array<i64: 8, 16>}, {pipeline_mode = #tpu.pipeline_mode<synchronous>, transform_indices = @transform_9, window_bounds = array<i64: 8, 1>}, {pipeline_mode = #tpu.pipeline_mode<synchronous>, transform_indices = @transform_10, window_bounds = array<i64: 8, 16>}, {pipeline_mode = #tpu.pipeline_mode<synchronous>, transform_indices = @transform_11, window_bounds = array<i64: 8, 1>}, {pipeline_mode = #tpu.pipeline_mode<synchronous>, transform_indices = @transform_12, window_bounds = array<i64: 8, 128>}, {pipeline_mode = #tpu.pipeline_mode<synchronous>, transform_indices = @transform_13, window_bounds = array<i64: 1, 128>}, {transform_indices = @transform_14, window_bounds = array<i64: 1, 1, 128>}]} {
    %c0 = arith.constant 0 : index
    %c0_0 = arith.constant 0 : index
    %0 = vector.load %arg1[%c0, %c0_0] : memref<8x128xf32, #tpu.memory_space<vmem>>, vector<8x128xf32>
    %c0_1 = arith.constant 0 : index
    %c0_2 = arith.constant 0 : index
    %1 = vector.load %arg2[%c0_1, %c0_2] : memref<3x128xf32, #tpu.memory_space<vmem>>, vector<1x128xf32>
    %c1_i32 = arith.constant 1 : i32
    %2 = tpu.dynamic_rotate %0 by %c1_i32 dim 1 : vector<8x128xf32>, i32 -> vector<8x128xf32>
    %3 = vector.broadcast %1 : vector<1x128xf32> to vector<8x128xf32>
    %4 = arith.mulf %3, %2 : vector<8x128xf32>
    %5 = tpu.concatenate %4, %0 in 0 : vector<8x128xf32>, vector<8x128xf32> -> vector<16x128xf32>
    %c0_3 = arith.constant 0 : index
    %c0_4 = arith.constant 0 : index
    %6 = vector.load %arg3[%c0_3, %c0_4] : memref<8x16xf32, #tpu.memory_space<vmem>>, vector<8x16xf32>
    %cst = arith.constant dense<0.000000e+00> : vector<8x128xf32>
    %7 = tpu.matmul %6, %5, %cst {dimension_numbers = #tpu.dot_dimension_numbers<[1], [0], [0], [1], [0, 0, 1, 1], [], []>} : vector<8x16xf32>, vector<16x128xf32>, vector<8x128xf32> -> vector<8x128xf32>
    %c0_5 = arith.constant 0 : index
    %c0_6 = arith.constant 0 : index
    %8 = vector.load %arg4[%c0_5, %c0_6] : memref<8x1xf32, #tpu.memory_space<vmem>>, vector<8x1xf32>
    %9 = vector.broadcast %8 : vector<8x1xf32> to vector<8x128xf32>
    %10 = arith.addf %7, %9 : vector<8x128xf32>
    %cst_7 = arith.constant 0.000000e+00 : f32
    %11 = vector.broadcast %cst_7 : f32 to vector<8x128xf32>
    %12 = arith.maximumf %10, %11 : vector<8x128xf32>
    %c0_8 = arith.constant 0 : index
    %c0_9 = arith.constant 0 : index
    %13 = vector.load %arg2[%c0_8, %c0_9] : memref<3x128xf32, #tpu.memory_space<vmem>>, vector<1x128xf32>
    %c1_i32_10 = arith.constant 1 : i32
    %14 = tpu.dynamic_rotate %12 by %c1_i32_10 dim 1 : vector<8x128xf32>, i32 -> vector<8x128xf32>
    %15 = vector.broadcast %13 : vector<1x128xf32> to vector<8x128xf32>
    %16 = arith.mulf %15, %14 : vector<8x128xf32>
    %17 = tpu.concatenate %16, %12 in 0 : vector<8x128xf32>, vector<8x128xf32> -> vector<16x128xf32>
    %c0_11 = arith.constant 0 : index
    %c0_12 = arith.constant 0 : index
    %18 = vector.load %arg5[%c0_11, %c0_12] : memref<8x16xf32, #tpu.memory_space<vmem>>, vector<8x16xf32>
    %cst_13 = arith.constant dense<0.000000e+00> : vector<8x128xf32>
    %19 = tpu.matmul %18, %17, %cst_13 {dimension_numbers = #tpu.dot_dimension_numbers<[1], [0], [0], [1], [0, 0, 1, 1], [], []>} : vector<8x16xf32>, vector<16x128xf32>, vector<8x128xf32> -> vector<8x128xf32>
    %c0_14 = arith.constant 0 : index
    %c0_15 = arith.constant 0 : index
    %20 = vector.load %arg6[%c0_14, %c0_15] : memref<8x1xf32, #tpu.memory_space<vmem>>, vector<8x1xf32>
    %21 = vector.broadcast %20 : vector<8x1xf32> to vector<8x128xf32>
    %22 = arith.addf %19, %21 : vector<8x128xf32>
    %cst_16 = arith.constant 0.000000e+00 : f32
    %23 = vector.broadcast %cst_16 : f32 to vector<8x128xf32>
    %24 = arith.maximumf %22, %23 : vector<8x128xf32>
    %c0_17 = arith.constant 0 : index
    %c0_18 = arith.constant 0 : index
    %25 = vector.load %arg7[%c0_17, %c0_18] : memref<8x8xf32, #tpu.memory_space<vmem>>, vector<8x8xf32>
    %cst_19 = arith.constant dense<0.000000e+00> : vector<8x128xf32>
    %26 = tpu.matmul %25, %0, %cst_19 {dimension_numbers = #tpu.dot_dimension_numbers<[1], [0], [0], [1], [0, 0, 1, 1], [], []>} : vector<8x8xf32>, vector<8x128xf32>, vector<8x128xf32> -> vector<8x128xf32>
    %c0_20 = arith.constant 0 : index
    %c0_21 = arith.constant 0 : index
    %27 = vector.load %arg8[%c0_20, %c0_21] : memref<8x1xf32, #tpu.memory_space<vmem>>, vector<8x1xf32>
    %28 = vector.broadcast %27 : vector<8x1xf32> to vector<8x128xf32>
    %29 = arith.addf %26, %28 : vector<8x128xf32>
    %30 = arith.addf %24, %29 : vector<8x128xf32>
    %cst_22 = arith.constant 0.000000e+00 : f32
    %31 = vector.broadcast %cst_22 : f32 to vector<8x128xf32>
    %32 = arith.maximumf %30, %31 : vector<8x128xf32>
    %c1 = arith.constant 1 : index
    %c0_23 = arith.constant 0 : index
    %33 = vector.load %arg2[%c1, %c0_23] : memref<3x128xf32, #tpu.memory_space<vmem>>, vector<1x128xf32>
    %c2_i32 = arith.constant 2 : i32
    %34 = tpu.dynamic_rotate %32 by %c2_i32 dim 1 : vector<8x128xf32>, i32 -> vector<8x128xf32>
    %35 = vector.broadcast %33 : vector<1x128xf32> to vector<8x128xf32>
    %36 = arith.mulf %35, %34 : vector<8x128xf32>
    %37 = tpu.concatenate %36, %32 in 0 : vector<8x128xf32>, vector<8x128xf32> -> vector<16x128xf32>
    %c0_24 = arith.constant 0 : index
    %c0_25 = arith.constant 0 : index
    %38 = vector.load %arg9[%c0_24, %c0_25] : memref<8x16xf32, #tpu.memory_space<vmem>>, vector<8x16xf32>
    %cst_26 = arith.constant dense<0.000000e+00> : vector<8x128xf32>
    %39 = tpu.matmul %38, %37, %cst_26 {dimension_numbers = #tpu.dot_dimension_numbers<[1], [0], [0], [1], [0, 0, 1, 1], [], []>} : vector<8x16xf32>, vector<16x128xf32>, vector<8x128xf32> -> vector<8x128xf32>
    %c0_27 = arith.constant 0 : index
    %c0_28 = arith.constant 0 : index
    %40 = vector.load %arg10[%c0_27, %c0_28] : memref<8x1xf32, #tpu.memory_space<vmem>>, vector<8x1xf32>
    %41 = vector.broadcast %40 : vector<8x1xf32> to vector<8x128xf32>
    %42 = arith.addf %39, %41 : vector<8x128xf32>
    %cst_29 = arith.constant 0.000000e+00 : f32
    %43 = vector.broadcast %cst_29 : f32 to vector<8x128xf32>
    %44 = arith.maximumf %42, %43 : vector<8x128xf32>
    %c1_30 = arith.constant 1 : index
    %c0_31 = arith.constant 0 : index
    %45 = vector.load %arg2[%c1_30, %c0_31] : memref<3x128xf32, #tpu.memory_space<vmem>>, vector<1x128xf32>
    %c2_i32_32 = arith.constant 2 : i32
    %46 = tpu.dynamic_rotate %44 by %c2_i32_32 dim 1 : vector<8x128xf32>, i32 -> vector<8x128xf32>
    %47 = vector.broadcast %45 : vector<1x128xf32> to vector<8x128xf32>
    %48 = arith.mulf %47, %46 : vector<8x128xf32>
    %49 = tpu.concatenate %48, %44 in 0 : vector<8x128xf32>, vector<8x128xf32> -> vector<16x128xf32>
    %c0_33 = arith.constant 0 : index
    %c0_34 = arith.constant 0 : index
    %50 = vector.load %arg11[%c0_33, %c0_34] : memref<8x16xf32, #tpu.memory_space<vmem>>, vector<8x16xf32>
    %cst_35 = arith.constant dense<0.000000e+00> : vector<8x128xf32>
    %51 = tpu.matmul %50, %49, %cst_35 {dimension_numbers = #tpu.dot_dimension_numbers<[1], [0], [0], [1], [0, 0, 1, 1], [], []>} : vector<8x16xf32>, vector<16x128xf32>, vector<8x128xf32> -> vector<8x128xf32>
    %c0_36 = arith.constant 0 : index
    %c0_37 = arith.constant 0 : index
    %52 = vector.load %arg12[%c0_36, %c0_37] : memref<8x1xf32, #tpu.memory_space<vmem>>, vector<8x1xf32>
    %53 = vector.broadcast %52 : vector<8x1xf32> to vector<8x128xf32>
    %54 = arith.addf %51, %53 : vector<8x128xf32>
    %cst_38 = arith.constant 0.000000e+00 : f32
    %55 = vector.broadcast %cst_38 : f32 to vector<8x128xf32>
    %56 = arith.maximumf %54, %55 : vector<8x128xf32>
    %57 = arith.addf %56, %32 : vector<8x128xf32>
    %cst_39 = arith.constant 0.000000e+00 : f32
    %58 = vector.broadcast %cst_39 : f32 to vector<8x128xf32>
    %59 = arith.maximumf %57, %58 : vector<8x128xf32>
    %c2 = arith.constant 2 : index
    %c0_40 = arith.constant 0 : index
    %60 = vector.load %arg2[%c2, %c0_40] : memref<3x128xf32, #tpu.memory_space<vmem>>, vector<1x128xf32>
    %61 = vector.broadcast %60 : vector<1x128xf32> to vector<8x128xf32>
    %62 = arith.mulf %59, %61 : vector<8x128xf32>
    %cst_41 = arith.constant dense<0.000000e+00> : vector<8xf32>
    %63 = vector.multi_reduction <add>, %62, %cst_41 [1] : vector<8x128xf32> to vector<8xf32>
    %64 = vector.shape_cast %63 : vector<8xf32> to vector<8x1xf32>
    %cst_42 = arith.constant 6.250000e-02 : f32
    %65 = vector.broadcast %cst_42 : f32 to vector<8x1xf32>
    %66 = arith.mulf %64, %65 : vector<8x1xf32>
    %c0_43 = arith.constant 0 : index
    %c0_44 = arith.constant 0 : index
    %67 = vector.load %arg13[%c0_43, %c0_44] : memref<8x128xf32, #tpu.memory_space<vmem>>, vector<8x128xf32>
    %cst_45 = arith.constant dense<0.000000e+00> : vector<1x128xf32>
    %68 = tpu.matmul %66, %67, %cst_45 {dimension_numbers = #tpu.dot_dimension_numbers<[0], [0], [1], [1], [0, 1, 1, 1], [], []>} : vector<8x1xf32>, vector<8x128xf32>, vector<1x128xf32> -> vector<1x128xf32>
    %c0_46 = arith.constant 0 : index
    %c0_47 = arith.constant 0 : index
    %69 = vector.load %arg14[%c0_46, %c0_47] : memref<1x128xf32, #tpu.memory_space<vmem>>, vector<1x128xf32>
    %70 = arith.addf %68, %69 : vector<1x128xf32>
    %c0_48 = arith.constant 0 : index
    %c0_49 = arith.constant 0 : index
    %c0_50 = arith.constant 0 : index
    %71 = vector.load %arg15[%c0_48, %c0_49, %c0_50] : memref<1x1x128xf32, #tpu.memory_space<vmem>>, vector<1x1x128xf32>
    %72 = vector.shape_cast %71 : vector<1x1x128xf32> to vector<1x128xf32>
    %73 = vector.shape_cast %70 : vector<1x128xf32> to vector<1x1x128xf32>
    tpu.vector_store %arg15[%c0_48, %c0_49, %c0_50], %73 {strides = array<i32>} : memref<1x1x128xf32, #tpu.memory_space<vmem>>, vector<1x1x128xf32>,
    return
  }
  func.func @transform_0(%arg0: i32) -> (i32, i32) {
    %c0_i32 = arith.constant 0 : i32
    %c0_i32_0 = arith.constant 0 : i32
    return %c0_i32, %arg0 : i32, i32
  }
  func.func @transform_1(%arg0: i32) -> (i32, i32) {
    %c0_i32 = arith.constant 0 : i32
    %c0_i32_0 = arith.constant 0 : i32
    %c0_i32_1 = arith.constant 0 : i32
    return %c0_i32, %c0_i32_0 : i32, i32
  }
  func.func @transform_2(%arg0: i32) -> (i32, i32) {
    %c0_i32 = arith.constant 0 : i32
    %c0_i32_0 = arith.constant 0 : i32
    %c0_i32_1 = arith.constant 0 : i32
    return %c0_i32, %c0_i32_0 : i32, i32
  }
  func.func @transform_3(%arg0: i32) -> (i32, i32) {
    %c0_i32 = arith.constant 0 : i32
    %c0_i32_0 = arith.constant 0 : i32
    %c0_i32_1 = arith.constant 0 : i32
    return %c0_i32, %c0_i32_0 : i32, i32
  }
  func.func @transform_4(%arg0: i32) -> (i32, i32) {
    %c0_i32 = arith.constant 0 : i32
    %c0_i32_0 = arith.constant 0 : i32
    %c0_i32_1 = arith.constant 0 : i32
    return %c0_i32, %c0_i32_0 : i32, i32
  }
  func.func @transform_5(%arg0: i32) -> (i32, i32) {
    %c0_i32 = arith.constant 0 : i32
    %c0_i32_0 = arith.constant 0 : i32
    %c0_i32_1 = arith.constant 0 : i32
    return %c0_i32, %c0_i32_0 : i32, i32
  }
  func.func @transform_6(%arg0: i32) -> (i32, i32) {
    %c0_i32 = arith.constant 0 : i32
    %c0_i32_0 = arith.constant 0 : i32
    %c0_i32_1 = arith.constant 0 : i32
    return %c0_i32, %c0_i32_0 : i32, i32
  }
  func.func @transform_7(%arg0: i32) -> (i32, i32) {
    %c0_i32 = arith.constant 0 : i32
    %c0_i32_0 = arith.constant 0 : i32
    %c0_i32_1 = arith.constant 0 : i32
    return %c0_i32, %c0_i32_0 : i32, i32
  }
  func.func @transform_8(%arg0: i32) -> (i32, i32) {
    %c0_i32 = arith.constant 0 : i32
    %c0_i32_0 = arith.constant 0 : i32
    %c0_i32_1 = arith.constant 0 : i32
    return %c0_i32, %c0_i32_0 : i32, i32
  }
  func.func @transform_9(%arg0: i32) -> (i32, i32) {
    %c0_i32 = arith.constant 0 : i32
    %c0_i32_0 = arith.constant 0 : i32
    %c0_i32_1 = arith.constant 0 : i32
    return %c0_i32, %c0_i32_0 : i32, i32
  }
  func.func @transform_10(%arg0: i32) -> (i32, i32) {
    %c0_i32 = arith.constant 0 : i32
    %c0_i32_0 = arith.constant 0 : i32
    %c0_i32_1 = arith.constant 0 : i32
    return %c0_i32, %c0_i32_0 : i32, i32
  }
  func.func @transform_11(%arg0: i32) -> (i32, i32) {
    %c0_i32 = arith.constant 0 : i32
    %c0_i32_0 = arith.constant 0 : i32
    %c0_i32_1 = arith.constant 0 : i32
    return %c0_i32, %c0_i32_0 : i32, i32
  }
  func.func @transform_12(%arg0: i32) -> (i32, i32) {
    %c0_i32 = arith.constant 0 : i32
    %c0_i32_0 = arith.constant 0 : i32
    %c0_i32_1 = arith.constant 0 : i32
    return %c0_i32, %c0_i32_0 : i32, i32
  }
  func.func @transform_13(%arg0: i32) -> (i32, i32) {
    %c0_i32 = arith.constant 0 : i32
    %c0_i32_0 = arith.constant 0 : i32
    %c0_i32_1 = arith.constant 0 : i32
    return %c0_i32, %c0_i32_0 : i32, i32
  }
  func.func @transform_14(%arg0: i32) -> (i32, i32, i32) {
    %c0_i32 = arith.constant 0 : i32
    %c0_i32_0 = arith.constant 0 : i32
    %c0_i32_1 = arith.constant 0 : i32
    return %arg0, %c0_i32, %c0_i32_0 : i32, i32, i32
  }
}

</mosaic_0001>

<bundles_post_ra>
// kernel: tpu_custom_call.1
= control target key start
LH: loop header
LB: loop body
LE: loop exit
PB: predicated region body
PF: predicated region fallthrough
CT: control target
= control target key end

     0   :  { %s1271_s0 = inlined_call_operand.vmem [shape: f32[8,256], index: 0, kind: input, shape index: {}]   ;;  %s1272_s1 = inlined_call_operand.hbm [shape: f32[3,128], index: 1, kind: input, shape index: {}]   ;;  %s1273_s2 = inlined_call_operand.vmem [shape: f32[8,16], index: 2, kind: input, shape index: {}]   ;;  %s1274_s3 = inlined_call_operand.vmem [shape: f32[8,1], index: 3, kind: input, shape index: {}]   ;;  %s1275_s4 = inlined_call_operand.vmem [shape: f32[8,16], index: 4, kind: input, shape index: {}]   ;;  %s1276_s5 = inlined_call_operand.vmem [shape: f32[8,1], index: 5, kind: input, shape index: {}]   ;;  %s1277_s6 = inlined_call_operand.vmem [shape: f32[8,8], index: 6, kind: input, shape index: {}]   ;;  %s1278_s7 = inlined_call_operand.vmem [shape: f32[8,1], index: 7, kind: input, shape index: {}]   ;;  %s1279_s8 = inlined_call_operand.vmem [shape: f32[8,16], index: 8, kind: input, shape index: {}]   ;;  %s1280_s9 = inlined_call_operand.vmem [shape: f32[8,1], index: 9, kind: input, shape index: {}]   ;;  %s1281_s10 = inlined_call_operand.hbm [shape: f32[8,16], index: 10, kind: input, shape index: {}]   ;;  %s1282_s11 = inlined_call_operand.vmem [shape: f32[8,1], index: 11, kind: input, shape index: {}]   ;;  %s1283_s12 = inlined_call_operand.vmem [shape: f32[8,128], index: 12, kind: input, shape index: {}]   ;;  %s1284_s13 = inlined_call_operand.vmem [shape: f32[1,128], index: 13, kind: input, shape index: {}]   ;;  %s1285_s14 = inlined_call_operand.hbm [shape: f32[2,1,128], index: 14, kind: output, shape index: {}]  }
   0x1   :  { %1290 = sst [smem:[#allocation15_spill]] %s1271_s0 }
   0x2   :  { %19 = vsyncpa [#allocation3], 0 }
   0x3   :  { %20 = vsyncpa [#allocation6], 0 }
   0x4   :  { %21 = vsyncpa [#allocation4], 0 }
   0x5   :  { %23 = vsyncpa [#allocation4 + $0x1], 0  ;;  %s1122_s29 = smov 0   ;;  %s1124_s30 = smov 0  }
   0x6   :  { %s1126_s15 = smov 0   ;;  %s1128_s16 = smov 0  }
   0x7 LB: > { %1291 = sst [smem:[#allocation11_spill]] %s1036_s15  ;;  %s1143_s17 = sadd.s32 4294967295, %s1040_s16   ;;  %s1040_s16 = sphi %s1128_s16, %s1300_s16   ;;  %s1036_s15 = sphi %s1126_s15, %s1302_s15   ;;  %s1032_s30 = sphi %s1124_s30, %s1304_s30   ;;  %s1028_s29 = sphi %s1122_s29, %s1303_s29  }
   0x8   : > { %s823_s18 = sadd.s32 4294967294, %s1040_s16   ;;  %s1147_s19 = sadd.s32 1, %s1040_s16  }
   0x9   : > { %1292 = sst [smem:[#allocation12_spill]] %s1147_s19  ;;  %s335_s20 = sadd.s32 1, %s1036_s15 }
   0xa   : > { %s332_s21 = ssub.s32 %s1040_s16, %s1147_s19  ;;  %p345_p0 = scmp.ne.s32.totalorder %s1036_s15, %s1032_s30 }
   0xb   : > { %p333_p1 = scmp.eq.s32.totalorder %s332_s21, 0  ;;  %p346_p2 = scmp.eq.s32.totalorder %s1143_s17, 1 }
   0xc   : > { %p351_p3 = scmp.ne.s32.totalorder %s1032_s30, %s1028_s29  ;;  %p352_p4 = scmp.eq.s32.totalorder %s823_s18, 1 }
   0xd   : > { %s1158_s22 = scalar_select %p333_p1, %s1036_s15, %s335_s20  }
   0xe   : > { %p1160_p5 = por %p346_p2, %p345_p0  ;;  %p1164_p6 = por %p352_p4, %p351_p3 }
   0xf   : > { %1293 = sst [smem:[#allocation13_spill]] %s1158_s22  ;;  %p824_p7 = scmp.ge.s32.totalorder %s1040_s16, 1 }
  0x10   : > { %s1295_s24 = scalar_select %p1164_p6, 1, 0 }
  0x11   : > { %p359_p8 = scmp.lt.s32.totalorder %s1040_s16, 3  ;;  %p861_p9 = scmp.eq.s32.totalorder %s1143_s17, 0 }
  0x12   : > { %1296 = sst [smem:[#allocation14_spill]] %s1295_s24  ;;  %s371_s28 = sshll.u32 %s1272_s1, 4  ;;  %s372_s28 = int_to_ptr.hbm [resolvable:$true] %s371_s28 }
  0x13   : > { %p1171_p10 = pnand %p824_p7, %p359_p8  ;;  %s1042_s18 = smov [#allocation2]  }
  0x14   : > { %s373_s20 = sshll.u32 %s1042_s18, 4  ;;  %s407_s15 = sshll.u32 %s1281_s10, 4  ;;  %s374_s20 = int_to_ptr.vmem [resolvable:$true] %s373_s20  ;;  %s408_s15 = int_to_ptr.hbm [resolvable:$true] %s407_s15 }
  0x15   : > { %p850_p11 = pneg %p1171_p10  ;;  %s1043_s19 = smov [#allocation5]  }
  0x16   : > { %s409_s24 = sshll.u32 %s1043_s19, 4  ;;  %438 = sbr.rel (%p1171_p10) target bundleno = 1407 (0x57f), region = 76  ;;  %s410_s24 = int_to_ptr.vmem [resolvable:$true] %s409_s24 }
  0x17   : > { %p851_p12 = pnand %p861_p9, %p850_p11 }
  0x19   : > { %853 = dma.hbm_to_vmem [thread:$0]  (!%p851_p12), %s372_s28, 64, %s374_s20, [#allocation3]  }
  0x1a   : > { %856 = dma.hbm_to_vmem [thread:$0]  (!%p851_p12), %s408_s15, 128, %s410_s24, [#allocation6]  }
  0x1b   : > { %1015 = dma.done.wait (%p861_p9), [#allocation3], 64  }
  0x1c   : > { %1017 = vsyncadd (%p861_p9), [#allocation3], 4294967232 }
  0x1d   : > { %1019 = dma.done.wait (%p861_p9), [#allocation6], 128  }
  0x1e   : > { %1021 = vsyncadd (%p861_p9), [#allocation6], 4294967168  ;;  %p488_p13 = scmp.lt.s32.totalorder %s1143_s17, 1  ;;  %s1298_s0 = sld [smem:[#allocation15_spill]]  ;;  %v499_v1 = vld [vmem:[%s1274_s3] sm:$0xff]  ;;  %v1045_v2 = vmov 0  }
  0x1f   : > { %s1044_s26 = smov 1   ;;  %904 = vset.pattern.permute.xlu0 %v1045_v2  ;;  %905 = vset.pattern.permute.xlu1 %v1045_v2  ;;  %v637_v3 = vld [vmem:[%s1282_s11] sm:$0xff]  ;;  %vm505_vm0 = vcmask 130048   ;;  %vm571_vm1 = vcmask 64512   ;;  %s486_s27 = sand.u32 1, %s1032_s30  }
  0x20   : > { %s489_s19 = scalar_select %p488_p13, %s1143_s17, 1  ;;  %906 = vset.pattern.permute.xlu2 %v1045_v2  ;;  %v907_v4 = vld [vmem:[#allocation2] ss:$0 sm:$0xff]  ;;  %v908_v28 = vld [vmem:[#allocation2 + $0x1] ss:$0 sm:$0xff]  ;;  %v636_v38 = vld [vmem:[#allocation5] sm:$0xff] }
  0x21   : > { %v498_v7 = vld [vmem:[%s1273_s2] sm:$0xff]  ;;  %s742_s20 = scalar_lea.hbm %s1285_s14, %s1143_s17  ;;  %s734_s24 = scalar_lea.sflag [#allocation4], %s486_s27 }
  0x22   : > { %s831_s15 = sshll.u32 %s489_s19, 3  ;;  %v564_v8 = vld [vmem:[%s1277_s6] sm:$0xff]  ;;  %s1046_s19 = smov 2  }
  0x23   : > { %v534_v13 = vld [vmem:[%s1276_s5] sm:$0xff]  ;;  %s746_s22 = sshll.u32 %s742_s20, 4  ;;  %s990_s18 = scalar_lea.hbm %s1285_s14, 2  ;;  %s747_s22 = int_to_ptr.hbm [resolvable:$true] %s746_s22 }
  0x24   : > { %s491_s25 = scalar_lea.vmem %s1298_s0, %s831_s15  ;;  %v565_v14 = vld [vmem:[%s1278_s7] sm:$0xff] }
  0x25   : > { %v492_v0 = vld [vmem:[%s491_s25] sm:$0xff]  ;;  %568 = vperm.xlu2 %906, %v565_v14   ;;  %s984_s25 = sshra.s32 %s747_s22, 4  ;;  %s985_s25 = int_to_ptr.hbm [resolvable:$true] %s984_s25 }
  0x26   : > { %494 = vrot.lane.b32.xlu0 %v492_v0, %s1044_s26  ;;  %523 = vmatpush.msra.mxu0 %v492_v0  ;;  %v603_v15 = vld [vmem:[%s1280_s9] sm:$0xff]  ;;  %s986_s0 = scalar_lea.hbm %s985_s25, 1  ;;  %p991_p3 = scmp.lt.s32.totalorder %s985_s25, %s1285_s14 }
  0x27   : > { %590 = vmatpush.msra.mxu2 %v492_v0  ;;  %v533_v18 = vld [vmem:[%s1275_s4] sm:$0xff]  ;;  %p987_p0 = scmp.ne.s32.totalorder %s985_s25, %s986_s0  ;;  %p992_p4 = scmp.lt.s32.totalorder %s990_s18, %s986_s0 }
  0x28   : > { %834 = vmatmul.msk.f32.vlgmr.msra.gmra.mxu2 %vm571_vm1, %v564_v8  ;;  %v602_v31 = vld [vmem:[%s1279_s8] sm:$0xff] }
  0x29   : > { %v909_v44 = vld [vmem:[#allocation2 + $0x2] ss:$0 sm:$0xff]  ;;  %v676_v51 = vld [vmem:[%s1284_s13] sm:$0x1]  ;;  %p988_p1 = pnand %p987_p0, %p1160_p5  ;;  %p993_p7 = por %p992_p4, %p991_p3 }
  0x2a   : > { %v675_v47 = vld [vmem:[%s1283_s12] sm:$0xff] }
  0x2b   : > { %p989_p2 = pneg %p988_p1 }
  0x2d   : > { %p994_p8 = pnand %p993_p7, %p989_p2 }
  0x2e   : > { %502 = vperm.xlu0 %904, %v499_v1  }
  0x36   : > { %640 = vperm.xlu0 %904, %v637_v3  }
  0x7f   : > { %v569_v19 = vpop.permute.xlu2 %568 }
  0x98   : > { %v495_v5 = vpop.permute.xlu0 %494 }
  0x99   : > { %v497_v6 = vmul.f32 %v907_v4, %v495_v5 }
  0x9b   : > { %524 = vmatpush.msra.mxu0 %v497_v6 }
  0x9c   : > { %832 = vmatmul.msk.f32.vlgmr.msra.gmra.mxu0 %vm505_vm0, %v498_v7 }
  0x9d   : > { %727 = vmatpush.msrb.mxu0 %v675_v47 }
  0xa0   : > { %v503_v9 = vpop.permute.xlu0 %502 }
  0xa8   : > { %v641_v39 = vpop.permute.xlu0 %640 }
  0xab   : > { %v592_v20 = vpop.f32.mrf.mxu2 }
  0xac   : > { %v593_v24 = vadd.f32 %v592_v20, %v569_v19 }
 0x119   : > { %v526_v10 = vpop.f32.mrf.mxu0 }
 0x11a   : > { %v527_v11 = vadd.f32 %v526_v10, %v503_v9 }
 0x11c   : > { %v529_v12 = vmax.f32 %v527_v11, 0.0 }
 0x11e   : > { %530 = vrot.lane.b32.xlu1 %v529_v12, %s1044_s26  ;;  %557 = vmatpush.msra.mxu1 %v529_v12 }
 0x126   : > { %537 = vperm.xlu1 %905, %v534_v13  }
 0x12e   : > { %606 = vperm.xlu1 %905, %v603_v15  }
 0x190   : > { %v531_v16 = vpop.permute.xlu1 %530 }
 0x191   : > { %v532_v17 = vmul.f32 %v907_v4, %v531_v16 }
 0x193   : > { %558 = vmatpush.msra.mxu1 %v532_v17 }
 0x194   : > { %833 = vmatmul.msk.f32.vlgmr.msra.gmra.mxu1 %vm505_vm0, %v533_v18 }
 0x198   : > { %v538_v21 = vpop.permute.xlu1 %537 }
 0x1a0   : > { %v607_v32 = vpop.permute.xlu1 %606 }
 0x211   : > { %v560_v22 = vpop.f32.mrf.mxu1 }
 0x212   : > { %v561_v23 = vadd.f32 %v560_v22, %v538_v21 }
 0x214   : > { %v563_v25 = vmax.f32 %v561_v23, 0.0 }
 0x216   : > { %v595_v26 = vadd.f32 %v593_v24, %v563_v25 }
 0x218   : > { %v596_v27 = vmax.f32 %v595_v26, 0.0 }
 0x21a   : > { %598 = vrot.lane.b32.xlu2 %v596_v27, %s1046_s19  ;;  %626 = vmatpush.msra.mxu3 %v596_v27 }
 0x274   : > { %v599_v29 = vpop.permute.xlu2 %598 }
 0x275   : > { %v601_v30 = vmul.f32 %v908_v28, %v599_v29 }
 0x277   : > { %627 = vmatpush.msra.mxu3 %v601_v30 }
 0x278   : > { %835 = vmatmul.msk.f32.vlgmr.msra.gmra.mxu3 %vm505_vm0, %v602_v31 }
 0x2fb   : > { %v629_v33 = vpop.f32.mrf.mxu3 }
 0x2fc   : > { %v630_v34 = vadd.f32 %v629_v33, %v607_v32 }
 0x2fe   : > { %v632_v35 = vmax.f32 %v630_v34, 0.0 }
 0x300   : > { %633 = vrot.lane.b32.xlu2 %v632_v35, %s1046_s19  ;;  %660 = vmatpush.msrb.mxu2 %v632_v35  ;;  %s487_s19 = scalar_lea.vmem [#allocation7], %s486_s27 }
 0x301   : > { %s744_s15 = sshll.u32 %s487_s19, 4  ;;  %s745_s15 = int_to_ptr.vmem [resolvable:$true] %s744_s15 }
 0x35a   : > { %v634_v36 = vpop.permute.xlu2 %633 }
 0x35b   : > { %v635_v37 = vmul.f32 %v908_v28, %v634_v36 }
 0x35d   : > { %661 = vmatpush.msrb.mxu2 %v635_v37 }
 0x35e   : > { %836 = vmatmul.msk.f32.vlgmr.msrb.gmra.mxu2 %vm505_vm0, %v636_v38 }
 0x3e1   : > { %v663_v40 = vpop.f32.mrf.mxu2 }
 0x3e2   : > { %v664_v41 = vadd.f32 %v663_v40, %v641_v39 }
 0x3e4   : > { %v666_v42 = vmax.f32 %v664_v41, 0.0 }
 0x3e6   : > { %v667_v43 = vadd.f32 %v666_v42, %v596_v27 }
 0x3e8   : > { %v668_v45 = vmax.f32 %v667_v43, 0.0 }
 0x3ea   : > { %v671_v46 = vmul.f32 %v909_v44, %v668_v45 }
 0x3ec   : > { %672 = vadd.xlane.f32.xlu1 %v671_v46 }
 0x45f   : > { %v673_v48 = vpop.xlane.xlu1 %672 }
 0x460   : > { %v674_v49 = vmul.f32 0.0625, %v673_v48 }
 0x462   : > { %677 = vxpose.xlu2.b32.start.end [1/1] (short) (narrow) %v674_v49, 8 }
 0x4fb   : > { %v693_v50 = vpop.trf.xlu2 }
 0x4fc   : > { %837 = vmatmul.msk.f32.vlgmr.msrb.gmra.mxu0 %vm571_vm1, %v693_v50 }
 0x579   : > { %v729_v52 = vpop.f32.mrf.mxu0 }
 0x57a   : > { %v730_v53 = vadd.f32 %v729_v52, %v676_v51 }
 0x57c   : > { %732 = vst [vmem:[%s487_s19] sm:$0x1] %v730_v53 }
 0x57d   : > { %997 = shalt.err (!%p994_p8)
}
 0x57e   : > { %848 = dma.vmem_to_hbm [thread:$0]  (%p1160_p5), %s745_s15, 16, %s747_s22, %s734_s24  }
 0x57f PF: > { %p865_p9 = scmp.ge.s32.totalorder %s1040_s16, 2  ;;  %s758_s20 = sand.u32 1, %s1028_s29  }
 0x580   : > { %s759_s19 = scalar_lea.sflag [#allocation4], %s758_s20 }
 0x581   : > { %p858_p10 = pnand %p865_p9, %p1164_p6 }
 0x583   : > { %p859_p11 = pneg %p858_p10 }
 0x585   : > { %1023 = dma.done.wait (%p859_p11), %s759_s19, 16  }
 0x586   : > { %1025 = vsyncadd (%p859_p11), %s759_s19, 4294967280  ;;  %s1300_s16 = sld [smem:[#allocation12_spill]]  ;;  %s1303_s29 = smov %s1032_s30 }
 0x587   : > { %s1301_s0 = sld [smem:[#allocation11_spill]] }
 0x588   : > { %s1302_s15 = sld [smem:[#allocation13_spill]] }
 0x58c   : > { %p26_p12 = scmp.ge.s32.totalorder %s1300_s16, 4  }
 0x58d   : > { %s1304_s30 = smov %s1301_s0 }
 0x58e   :  { %28 = sbr.rel (!%p26_p12) target bundleno = 7 (0x7), region = 120 }
 0x593   :  { %764 = vsyncpa [#allocation3], 1 }
 0x594   :  { %766 = vsyncpa [#allocation3 + $0x1], 1 }
 0x595   :  { %767 = vsyncpa [#allocation6], 1 }
 0x596   :  { %768 = vsyncpa [#allocation4], 1 }
 0x597   :  { %770 = vsyncpa [#allocation4 + $0x1], 1 }

// kernel: tpu_custom_call.1
= control target key start
LH: loop header
LB: loop body
LE: loop exit
PB: predicated region body
PF: predicated region fallthrough
CT: control target
= control target key end

     0   :  { %s1271_s0 = inlined_call_operand.vmem [shape: f32[8,256], index: 0, kind: input, shape index: {}]   ;;  %s1272_s1 = inlined_call_operand.hbm [shape: f32[3,128], index: 1, kind: input, shape index: {}]   ;;  %s1273_s2 = inlined_call_operand.vmem [shape: f32[8,16], index: 2, kind: input, shape index: {}]   ;;  %s1274_s3 = inlined_call_operand.vmem [shape: f32[8,1], index: 3, kind: input, shape index: {}]   ;;  %s1275_s4 = inlined_call_operand.vmem [shape: f32[8,16], index: 4, kind: input, shape index: {}]   ;;  %s1276_s5 = inlined_call_operand.vmem [shape: f32[8,1], index: 5, kind: input, shape index: {}]   ;;  %s1277_s6 = inlined_call_operand.vmem [shape: f32[8,8], index: 6, kind: input, shape index: {}]   ;;  %s1278_s7 = inlined_call_operand.vmem [shape: f32[8,1], index: 7, kind: input, shape index: {}]   ;;  %s1279_s8 = inlined_call_operand.vmem [shape: f32[8,16], index: 8, kind: input, shape index: {}]   ;;  %s1280_s9 = inlined_call_operand.vmem [shape: f32[8,1], index: 9, kind: input, shape index: {}]   ;;  %s1281_s10 = inlined_call_operand.hbm [shape: f32[8,16], index: 10, kind: input, shape index: {}]   ;;  %s1282_s11 = inlined_call_operand.vmem [shape: f32[8,1], index: 11, kind: input, shape index: {}]   ;;  %s1283_s12 = inlined_call_operand.vmem [shape: f32[8,128], index: 12, kind: input, shape index: {}]   ;;  %s1284_s13 = inlined_call_operand.vmem [shape: f32[1,128], index: 13, kind: input, shape index: {}]   ;;  %s1285_s14 = inlined_call_operand.hbm [shape: f32[2,1,128], index: 14, kind: output, shape index: {}]  }
   0x1   :  { %1290 = sst [smem:[#allocation15_spill]] %s1271_s0 }
   0x2   :  { %19 = vsyncpa [#allocation3], 0 }
   0x3   :  { %20 = vsyncpa [#allocation6], 0 }
   0x4   :  { %21 = vsyncpa [#allocation4], 0 }
   0x5   :  { %23 = vsyncpa [#allocation4 + $0x1], 0  ;;  %s1122_s29 = smov 0   ;;  %s1124_s30 = smov 0  }
   0x6   :  { %s1126_s15 = smov 0   ;;  %s1128_s16 = smov 0  }
   0x7 LB: > { %1291 = sst [smem:[#allocation11_spill]] %s1036_s15  ;;  %s1143_s17 = sadd.s32 4294967295, %s1040_s16   ;;  %s1040_s16 = sphi %s1128_s16, %s1300_s16   ;;  %s1036_s15 = sphi %s1126_s15, %s1302_s15   ;;  %s1032_s30 = sphi %s1124_s30, %s1304_s30   ;;  %s1028_s29 = sphi %s1122_s29, %s1303_s29  }
   0x8   : > { %s823_s18 = sadd.s32 4294967294, %s1040_s16   ;;  %s1147_s19 = sadd.s32 1, %s1040_s16  }
   0x9   : > { %1292 = sst [smem:[#allocation12_spill]] %s1147_s19  ;;  %s335_s20 = sadd.s32 1, %s1036_s15 }
   0xa   : > { %s332_s21 = ssub.s32 %s1040_s16, %s1147_s19  ;;  %p345_p0 = scmp.ne.s32.totalorder %s1036_s15, %s1032_s30 }
   0xb   : > { %p333_p1 = scmp.eq.s32.totalorder %s332_s21, 0  ;;  %p346_p2 = scmp.eq.s32.totalorder %s1143_s17, 1 }
   0xc   : > { %p351_p3 = scmp.ne.s32.totalorder %s1032_s30, %s1028_s29  ;;  %p352_p4 = scmp.eq.s32.totalorder %s823_s18, 1 }
   0xd   : > { %s1158_s22 = scalar_select %p333_p1, %s1036_s15, %s335_s20  }
   0xe   : > { %p1160_p5 = por %p346_p2, %p345_p0  ;;  %p1164_p6 = por %p352_p4, %p351_p3 }
   0xf   : > { %1293 = sst [smem:[#allocation13_spill]] %s1158_s22  ;;  %p824_p7 = scmp.ge.s32.totalorder %s1040_s16, 1 }
  0x10   : > { %s1295_s24 = scalar_select %p1164_p6, 1, 0 }
  0x11   : > { %p359_p8 = scmp.lt.s32.totalorder %s1040_s16, 3  ;;  %p861_p9 = scmp.eq.s32.totalorder %s1143_s17, 0 }
  0x12   : > { %1296 = sst [smem:[#allocation14_spill]] %s1295_s24  ;;  %s371_s28 = sshll.u32 %s1272_s1, 4  ;;  %s372_s28 = int_to_ptr.hbm [resolvable:$true] %s371_s28 }
  0x13   : > { %p1171_p10 = pnand %p824_p7, %p359_p8  ;;  %s1042_s18 = smov [#allocation2]  }
  0x14   : > { %s373_s20 = sshll.u32 %s1042_s18, 4  ;;  %s407_s15 = sshll.u32 %s1281_s10, 4  ;;  %s374_s20 = int_to_ptr.vmem [resolvable:$true] %s373_s20  ;;  %s408_s15 = int_to_ptr.hbm [resolvable:$true] %s407_s15 }
  0x15   : > { %p850_p11 = pneg %p1171_p10  ;;  %s1043_s19 = smov [#allocation5]  }
  0x16   : > { %s409_s24 = sshll.u32 %s1043_s19, 4  ;;  %438 = sbr.rel (%p1171_p10) target bundleno = 1407 (0x57f), region = 76  ;;  %s410_s24 = int_to_ptr.vmem [resolvable:$true] %s409_s24 }
  0x17   : > { %p851_p12 = pnand %p861_p9, %p850_p11 }
  0x19   : > { %853 = dma.hbm_to_vmem [thread:$0]  (!%p851_p12), %s372_s28, 64, %s374_s20, [#allocation3]  }
  0x1a   : > { %856 = dma.hbm_to_vmem [thread:$0]  (!%p851_p12), %s408_s15, 128, %s410_s24, [#allocation6]  }
  0x1b   : > { %1015 = dma.done.wait (%p861_p9), [#allocation3], 64  }
  0x1c   : > { %1017 = vsyncadd (%p861_p9), [#allocation3], 4294967232 }
  0x1d   : > { %1019 = dma.done.wait (%p861_p9), [#allocation6], 128  }
  0x1e   : > { %1021 = vsyncadd (%p861_p9), [#allocation6], 4294967168  ;;  %p488_p13 = scmp.lt.s32.totalorder %s1143_s17, 1  ;;  %s1298_s0 = sld [smem:[#allocation15_spill]]  ;;  %v499_v1 = vld [vmem:[%s1274_s3] sm:$0xff]  ;;  %v1045_v2 = vmov 0  }
  0x1f   : > { %s1044_s26 = smov 1   ;;  %904 = vset.pattern.permute.xlu0 %v1045_v2  ;;  %905 = vset.pattern.permute.xlu1 %v1045_v2  ;;  %v637_v3 = vld [vmem:[%s1282_s11] sm:$0xff]  ;;  %vm505_vm0 = vcmask 130048   ;;  %vm571_vm1 = vcmask 64512   ;;  %s486_s27 = sand.u32 1, %s1032_s30  }
  0x20   : > { %s489_s19 = scalar_select %p488_p13, %s1143_s17, 1  ;;  %906 = vset.pattern.permute.xlu2 %v1045_v2  ;;  %v907_v4 = vld [vmem:[#allocation2] ss:$0 sm:$0xff]  ;;  %v908_v28 = vld [vmem:[#allocation2 + $0x1] ss:$0 sm:$0xff]  ;;  %v636_v38 = vld [vmem:[#allocation5] sm:$0xff] }
  0x21   : > { %v498_v7 = vld [vmem:[%s1273_s2] sm:$0xff]  ;;  %s742_s20 = scalar_lea.hbm %s1285_s14, %s1143_s17  ;;  %s734_s24 = scalar_lea.sflag [#allocation4], %s486_s27 }
  0x22   : > { %s831_s15 = sshll.u32 %s489_s19, 3  ;;  %v564_v8 = vld [vmem:[%s1277_s6] sm:$0xff]  ;;  %s1046_s19 = smov 2  }
  0x23   : > { %v534_v13 = vld [vmem:[%s1276_s5] sm:$0xff]  ;;  %s746_s22 = sshll.u32 %s742_s20, 4  ;;  %s990_s18 = scalar_lea.hbm %s1285_s14, 2  ;;  %s747_s22 = int_to_ptr.hbm [resolvable:$true] %s746_s22 }
  0x24   : > { %s491_s25 = scalar_lea.vmem %s1298_s0, %s831_s15  ;;  %v565_v14 = vld [vmem:[%s1278_s7] sm:$0xff] }
  0x25   : > { %v492_v0 = vld [vmem:[%s491_s25] sm:$0xff]  ;;  %568 = vperm.xlu2 %906, %v565_v14   ;;  %s984_s25 = sshra.s32 %s747_s22, 4  ;;  %s985_s25 = int_to_ptr.hbm [resolvable:$true] %s984_s25 }
  0x26   : > { %494 = vrot.lane.b32.xlu0 %v492_v0, %s1044_s26  ;;  %523 = vmatpush.msra.mxu0 %v492_v0  ;;  %v603_v15 = vld [vmem:[%s1280_s9] sm:$0xff]  ;;  %s986_s0 = scalar_lea.hbm %s985_s25, 1  ;;  %p991_p3 = scmp.lt.s32.totalorder %s985_s25, %s1285_s14 }
  0x27   : > { %590 = vmatpush.msra.mxu2 %v492_v0  ;;  %v533_v18 = vld [vmem:[%s1275_s4] sm:$0xff]  ;;  %p987_p0 = scmp.ne.s32.totalorder %s985_s25, %s986_s0  ;;  %p992_p4 = scmp.lt.s32.totalorder %s990_s18, %s986_s0 }
  0x28   : > { %834 = vmatmul.msk.f32.vlgmr.msra.gmra.mxu2 %vm571_vm1, %v564_v8  ;;  %v602_v31 = vld [vmem:[%s1279_s8] sm:$0xff] }
  0x29   : > { %v909_v44 = vld [vmem:[#allocation2 + $0x2] ss:$0 sm:$0xff]  ;;  %v676_v51 = vld [vmem:[%s1284_s13] sm:$0x1]  ;;  %p988_p1 = pnand %p987_p0, %p1160_p5  ;;  %p993_p7 = por %p992_p4, %p991_p3 }
  0x2a   : > { %v675_v47 = vld [vmem:[%s1283_s12] sm:$0xff] }
  0x2b   : > { %p989_p2 = pneg %p988_p1 }
  0x2d   : > { %p994_p8 = pnand %p993_p7, %p989_p2 }
  0x2e   : > { %502 = vperm.xlu0 %904, %v499_v1  }
  0x36   : > { %640 = vperm.xlu0 %904, %v637_v3  }
  0x7f   : > { %v569_v19 = vpop.permute.xlu2 %568 }
  0x98   : > { %v495_v5 = vpop.permute.xlu0 %494 }
  0x99   : > { %v497_v6 = vmul.f32 %v907_v4, %v495_v5 }
  0x9b   : > { %524 = vmatpush.msra.mxu0 %v497_v6 }
  0x9c   : > { %832 = vmatmul.msk.f32.vlgmr.msra.gmra.mxu0 %vm505_vm0, %v498_v7 }
  0x9d   : > { %727 = vmatpush.msrb.mxu0 %v675_v47 }
  0xa0   : > { %v503_v9 = vpop.permute.xlu0 %502 }
  0xa8   : > { %v641_v39 = vpop.permute.xlu0 %640 }
  0xab   : > { %v592_v20 = vpop.f32.mrf.mxu2 }
  0xac   : > { %v593_v24 = vadd.f32 %v592_v20, %v569_v19 }
 0x119   : > { %v526_v10 = vpop.f32.mrf.mxu0 }
 0x11a   : > { %v527_v11 = vadd.f32 %v526_v10, %v503_v9 }
 0x11c   : > { %v529_v12 = vmax.f32 %v527_v11, 0.0 }
 0x11e   : > { %530 = vrot.lane.b32.xlu1 %v529_v12, %s1044_s26  ;;  %557 = vmatpush.msra.mxu1 %v529_v12 }
 0x126   : > { %537 = vperm.xlu1 %905, %v534_v13  }
 0x12e   : > { %606 = vperm.xlu1 %905, %v603_v15  }
 0x190   : > { %v531_v16 = vpop.permute.xlu1 %530 }
 0x191   : > { %v532_v17 = vmul.f32 %v907_v4, %v531_v16 }
 0x193   : > { %558 = vmatpush.msra.mxu1 %v532_v17 }
 0x194   : > { %833 = vmatmul.msk.f32.vlgmr.msra.gmra.mxu1 %vm505_vm0, %v533_v18 }
 0x198   : > { %v538_v21 = vpop.permute.xlu1 %537 }
 0x1a0   : > { %v607_v32 = vpop.permute.xlu1 %606 }
 0x211   : > { %v560_v22 = vpop.f32.mrf.mxu1 }
 0x212   : > { %v561_v23 = vadd.f32 %v560_v22, %v538_v21 }
 0x214   : > { %v563_v25 = vmax.f32 %v561_v23, 0.0 }
 0x216   : > { %v595_v26 = vadd.f32 %v593_v24, %v563_v25 }
 0x218   : > { %v596_v27 = vmax.f32 %v595_v26, 0.0 }
 0x21a   : > { %598 = vrot.lane.b32.xlu2 %v596_v27, %s1046_s19  ;;  %626 = vmatpush.msra.mxu3 %v596_v27 }
 0x274   : > { %v599_v29 = vpop.permute.xlu2 %598 }
 0x275   : > { %v601_v30 = vmul.f32 %v908_v28, %v599_v29 }
 0x277   : > { %627 = vmatpush.msra.mxu3 %v601_v30 }
 0x278   : > { %835 = vmatmul.msk.f32.vlgmr.msra.gmra.mxu3 %vm505_vm0, %v602_v31 }
 0x2fb   : > { %v629_v33 = vpop.f32.mrf.mxu3 }
 0x2fc   : > { %v630_v34 = vadd.f32 %v629_v33, %v607_v32 }
 0x2fe   : > { %v632_v35 = vmax.f32 %v630_v34, 0.0 }
 0x300   : > { %633 = vrot.lane.b32.xlu2 %v632_v35, %s1046_s19  ;;  %660 = vmatpush.msrb.mxu2 %v632_v35  ;;  %s487_s19 = scalar_lea.vmem [#allocation7], %s486_s27 }
 0x301   : > { %s744_s15 = sshll.u32 %s487_s19, 4  ;;  %s745_s15 = int_to_ptr.vmem [resolvable:$true] %s744_s15 }
 0x35a   : > { %v634_v36 = vpop.permute.xlu2 %633 }
 0x35b   : > { %v635_v37 = vmul.f32 %v908_v28, %v634_v36 }
 0x35d   : > { %661 = vmatpush.msrb.mxu2 %v635_v37 }
 0x35e   : > { %836 = vmatmul.msk.f32.vlgmr.msrb.gmra.mxu2 %vm505_vm0, %v636_v38 }
 0x3e1   : > { %v663_v40 = vpop.f32.mrf.mxu2 }
 0x3e2   : > { %v664_v41 = vadd.f32 %v663_v40, %v641_v39 }
 0x3e4   : > { %v666_v42 = vmax.f32 %v664_v41, 0.0 }
 0x3e6   : > { %v667_v43 = vadd.f32 %v666_v42, %v596_v27 }
 0x3e8   : > { %v668_v45 = vmax.f32 %v667_v43, 0.0 }
 0x3ea   : > { %v671_v46 = vmul.f32 %v909_v44, %v668_v45 }
 0x3ec   : > { %672 = vadd.xlane.f32.xlu1 %v671_v46 }
 0x45f   : > { %v673_v48 = vpop.xlane.xlu1 %672 }
 0x460   : > { %v674_v49 = vmul.f32 0.0625, %v673_v48 }
 0x462   : > { %677 = vxpose.xlu2.b32.start.end [1/1] (short) (narrow) %v674_v49, 8 }
 0x4fb   : > { %v693_v50 = vpop.trf.xlu2 }
 0x4fc   : > { %837 = vmatmul.msk.f32.vlgmr.msrb.gmra.mxu0 %vm571_vm1, %v693_v50 }
 0x579   : > { %v729_v52 = vpop.f32.mrf.mxu0 }
 0x57a   : > { %v730_v53 = vadd.f32 %v729_v52, %v676_v51 }
 0x57c   : > { %732 = vst [vmem:[%s487_s19] sm:$0x1] %v730_v53 }
 0x57d   : > { %997 = shalt.err (!%p994_p8)
}
 0x57e   : > { %848 = dma.vmem_to_hbm [thread:$0]  (%p1160_p5), %s745_s15, 16, %s747_s22, %s734_s24  }
 0x57f PF: > { %p865_p9 = scmp.ge.s32.totalorder %s1040_s16, 2  ;;  %s758_s20 = sand.u32 1, %s1028_s29  }
 0x580   : > { %s759_s19 = scalar_lea.sflag [#allocation4], %s758_s20 }
 0x581   : > { %p858_p10 = pnand %p865_p9, %p1164_p6 }
 0x583   : > { %p859_p11 = pneg %p858_p10 }
 0x585   : > { %1023 = dma.done.wait (%p859_p11), %s759_s19, 16  }
 0x586   : > { %1025 = vsyncadd (%p859_p11), %s759_s19, 4294967280  ;;  %s1300_s16 = sld [smem:[#allocation12_spill]]  ;;  %s1303_s29 = smov %s1032_s30 }
 0x587   : > { %s1301_s0 = sld [smem:[#allocation11_spill]] }
 0x588   : > { %s1302_s15 = sld [smem:[#allocation13_spill]] }
 0x58c   : > { %p26_p12 = scmp.ge.s32.totalorder %s1300_s16, 4  }
 0x58d   : > { %s1304_s30 = smov %s1301_s0 }
 0x58e   :  { %28 = sbr.rel (!%p26_p12) target bundleno = 7 (0x7), region = 120 }
 0x593   :  { %764 = vsyncpa [#allocation3], 1 }
 0x594   :  { %766 = vsyncpa [#allocation3 + $0x1], 1 }
 0x595   :  { %767 = vsyncpa [#allocation6], 1 }
 0x596   :  { %768 = vsyncpa [#allocation4], 1 }
 0x597   :  { %770 = vsyncpa [#allocation4 + $0x1], 1 }

</bundles_post_ra>
